<compile_context>
chip_gen: v7x
topology: tpu7x:2x2x1
jax: 0.10.0
libtpu: 0.0.40
codegen_flags: <defaults>
</compile_context>

<pallas_src>
import jax
import jax.numpy as jnp
from jax.experimental import pallas as pl
from jax.experimental.pallas import tpu as pltpu


def _agent_kernel(w_ref, x_ref, out_ref):
    """Fused Linear(IN->OUT) + LogSoftmax on a lane-dense batch tile.

    w_ref:   SMEM (OUT*(IN+1),) f32 — per output unit o: [W[o,0..IN-1], b[o]]
    x_ref:   VMEM (IN, TM, 128)     — x^T with the batch on (sublane, lane)
    out_ref: VMEM (OUT, TM, 128)    — log_softmax(x @ W^T + b), same layout
    """
    in_dim = x_ref.shape[0]
    out_dim = out_ref.shape[0]
    stride = in_dim + 1

    # Scalar-splat FMA contraction on the VPU: acc[o] = b[o] + sum_k W[o,k]*x[k].
    # Outer loop over k so every x row is read from VMEM exactly once.
    x0 = x_ref[0].astype(jnp.float32)
    acc = [w_ref[o * stride + in_dim] + w_ref[o * stride] * x0
           for o in range(out_dim)]
    for k in range(1, in_dim):
        xk = x_ref[k].astype(jnp.float32)
        for o in range(out_dim):
            acc[o] = acc[o] + w_ref[o * stride + k] * xk

    # Numerically stable log-softmax over the OUT logits, fully unrolled:
    # elementwise max/add on the VALU, exp/log on the EUP, no XLU reductions.
    m = acc[0]
    for o in range(1, out_dim):
        m = jnp.maximum(m, acc[o])
    s = jnp.exp(acc[0] - m)
    for o in range(1, out_dim):
        s = s + jnp.exp(acc[o] - m)
    lse = m + jnp.log(s)
    for o in range(out_dim):
        out_ref[o] = (acc[o] - lse).astype(out_ref.dtype)


def _round_up(v, m):
    return ((v + m - 1) // m) * m


def _agent_forward_pallas(x, weight, bias):
    """log_softmax(x @ W^T + b, axis=1) via the lane-dense Pallas kernel."""
    b_, in_ = x.shape
    out_ = weight.shape[0]
    dtype = x.dtype

    # Pad the batch to a multiple of 128 so it can sit on the lane axis.
    b_pad = _round_up(b_, 128)
    if b_pad != b_:
        x = jnp.pad(x, ((0, b_pad - b_), (0, 0)))
    n_lanes = b_pad // 128

    # Lane-dense layout: features on the leading axis, batch on (sublane, lane).
    x_t = x.T.reshape(in_, n_lanes, 128)

    # Flattened [W[o, :], b[o]] scalar table for SMEM (IN*OUT + OUT = 33 words).
    w_flat = jnp.concatenate(
        [weight.astype(jnp.float32), bias.astype(jnp.float32)[:, None]], axis=1
    ).reshape(-1)

    # Batch tiling: big tiles (512*128 = 65 536 rows ≈ 3.3 MB HBM traffic/step)
    # to amortize the ~0.35 µs per-step overhead; mid-size batches get >=2
    # blocks so the "parallel" axis shards across both TensorCores on v7x.
    TM_TARGET = 512
    if n_lanes <= 8:
        tm = n_lanes                       # single full-extent block
    elif n_lanes <= 2 * TM_TARGET:
        tm = max(8, _round_up(pl.cdiv(n_lanes, 2), 8))
    else:
        tm = TM_TARGET
    grid_b = pl.cdiv(n_lanes, tm)

    cost = pl.CostEstimate(
        flops=2 * b_pad * in_ * out_ + 5 * b_pad * out_,
        transcendentals=b_pad * (out_ + 1),
        bytes_accessed=4 * (b_pad * in_ + b_pad * out_ + int(w_flat.size)),
    )

    out_t = pl.pallas_call(
        _agent_kernel,
        out_shape=jax.ShapeDtypeStruct((out_, n_lanes, 128), dtype),
        grid=(grid_b,),
        in_specs=[
            pl.BlockSpec(memory_space=pltpu.MemorySpace.SMEM),       # weight scalars
            pl.BlockSpec((in_, tm, 128), lambda i: (0, i, 0)),       # lane-dense x tile
        ],
        out_specs=pl.BlockSpec((out_, tm, 128), lambda i: (0, i, 0)),
        compiler_params=pltpu.CompilerParams(
            dimension_semantics=("parallel",)),
        cost_estimate=cost,
    )(w_flat, x_t)

    out = out_t.reshape(out_, b_pad).T
    if b_pad != b_:
        out = out[:b_]
    return out


def reinforce_deterministic_wrapper(x, weight, bias):
    """Forward of ReinforceDeterministicWrapper(Linear(IN,OUT) + LogSoftmax).

    Args:
      x:      (B, IN)   float32
      weight: (OUT, IN) float32  (PyTorch nn.Linear convention)
      bias:   (OUT,)    float32
    Returns:
      (out, log_prob, entropy) with shapes (B, OUT), (1,), (1,).
    """
    b_, in_ = x.shape
    out_ = weight.shape[0]

    # ReinforceDeterministicWrapper: constant zero log-prob / entropy — produced
    # in the wrapper, no kernel output tiles or writeback DMAs needed for them.
    zero = jnp.zeros((1,), dtype=jnp.float32)

    # Tiny batches are dominated by custom-call launch + DMA setup (XLA fuses the
    # few-hundred-FLOP op into neighbors instead); very large feature dims should
    # use the MXU rather than splat FMAs.
    # TODO(synk): add an MXU (jnp.dot) kernel variant for agents with IN/OUT >= 128.
    if b_ <= 256 or in_ > 32 or out_ > 16:
        out = jax.nn.log_softmax(x @ weight.T + bias[None, :], axis=1)
        return out, zero, zero

    out = _agent_forward_pallas(x, weight, bias)
    return out, zero, zero


if __name__ == "__main__":
    IN, OUT = 10, 3  # matches the module's doctest agent Linear(10, 3)

    key = jax.random.PRNGKey(0)
    kx, kw, kb = jax.random.split(key, 3)

    # PyTorch Linear default init: U(-1/sqrt(IN), 1/sqrt(IN)).
    bound = 1.0 / (IN ** 0.5)
    weight = jax.random.uniform(kw, (OUT, IN), jnp.float32, -bound, bound)
    bias = jax.random.uniform(kb, (OUT,), jnp.float32, -bound, bound)

    # Doctest-scale batch (B=4): wrapper takes the fused-XLA small-batch path.
    x_small = jnp.ones((4, IN), jnp.float32)
    out_s, lp_s, ent_s = reinforce_deterministic_wrapper(x_small, weight, bias)

    # Batch large enough to exercise the Pallas kernel path.
    B = 512
    x = jax.random.normal(kx, (B, IN), jnp.float32)
    out, log_prob, entropy = reinforce_deterministic_wrapper(x, weight, bias)

    jax.block_until_ready((out_s, lp_s, ent_s, out, log_prob, entropy))

    # Sanity checks against the module semantics.
    ref_s = jax.nn.log_softmax(x_small @ weight.T + bias, axis=1)
    ref = jax.nn.log_softmax(x @ weight.T + bias, axis=1)
    assert out_s.shape == (4, OUT) and out.shape == (B, OUT)
    assert log_prob.shape == (1,) and entropy.shape == (1,)
    assert bool(jnp.all(log_prob == 0)) and bool(jnp.all(entropy == 0))
    assert bool(jnp.all(lp_s == 0)) and bool(jnp.all(ent_s == 0))
    assert bool(jnp.allclose(out_s, ref_s, atol=1e-5, rtol=1e-5))
    assert bool(jnp.allclose(out, ref, atol=1e-5, rtol=1e-5))

    print("KERNEL_OK")
</pallas_src>

<mosaic_0001>
module attributes {stable_mosaic.version = 11 : i64} {
  func.func @_agent_kernel(%arg0: i32, %arg1: memref<33xf32, #tpu.memory_space<smem>>, %arg2: memref<10x4x128xf32, #tpu.memory_space<vmem>>, %arg3: memref<3x4x128xf32, #tpu.memory_space<vmem>>) attributes {dimension_semantics = [#tpu.dimension_semantics<parallel>], iteration_bounds = array<i64: 1>, scalar_prefetch = 0 : i64, scratch_operands = 0 : i64, tpu.core_type = #tpu.core_type<tc>, window_params = [{transform_indices = @transform_0, window_bounds = array<i64: 33>}, {transform_indices = @transform_1, window_bounds = array<i64: 10, 4, 128>}, {transform_indices = @transform_2, window_bounds = array<i64: 3, 4, 128>}]} {
    %c0 = arith.constant 0 : index
    %c0_0 = arith.constant 0 : index
    %c0_1 = arith.constant 0 : index
    %0 = vector.load %arg2[%c0, %c0_0, %c0_1] : memref<10x4x128xf32, #tpu.memory_space<vmem>>, vector<1x4x128xf32>
    %1 = vector.shape_cast %0 : vector<1x4x128xf32> to vector<4x128xf32>
    %c10 = arith.constant 10 : index
    %2 = memref.load %arg1[%c10] : memref<33xf32, #tpu.memory_space<smem>>
    %c0_2 = arith.constant 0 : index
    %3 = memref.load %arg1[%c0_2] : memref<33xf32, #tpu.memory_space<smem>>
    %4 = vector.broadcast %3 : f32 to vector<4x128xf32>
    %5 = arith.mulf %4, %1 : vector<4x128xf32>
    %6 = vector.broadcast %2 : f32 to vector<4x128xf32>
    %7 = arith.addf %6, %5 : vector<4x128xf32>
    %c21 = arith.constant 21 : index
    %8 = memref.load %arg1[%c21] : memref<33xf32, #tpu.memory_space<smem>>
    %c11 = arith.constant 11 : index
    %9 = memref.load %arg1[%c11] : memref<33xf32, #tpu.memory_space<smem>>
    %10 = vector.broadcast %9 : f32 to vector<4x128xf32>
    %11 = arith.mulf %10, %1 : vector<4x128xf32>
    %12 = vector.broadcast %8 : f32 to vector<4x128xf32>
    %13 = arith.addf %12, %11 : vector<4x128xf32>
    %c32 = arith.constant 32 : index
    %14 = memref.load %arg1[%c32] : memref<33xf32, #tpu.memory_space<smem>>
    %c22 = arith.constant 22 : index
    %15 = memref.load %arg1[%c22] : memref<33xf32, #tpu.memory_space<smem>>
    %16 = vector.broadcast %15 : f32 to vector<4x128xf32>
    %17 = arith.mulf %16, %1 : vector<4x128xf32>
    %18 = vector.broadcast %14 : f32 to vector<4x128xf32>
    %19 = arith.addf %18, %17 : vector<4x128xf32>
    %c1 = arith.constant 1 : index
    %c0_3 = arith.constant 0 : index
    %c0_4 = arith.constant 0 : index
    %20 = vector.load %arg2[%c1, %c0_3, %c0_4] : memref<10x4x128xf32, #tpu.memory_space<vmem>>, vector<1x4x128xf32>
    %21 = vector.shape_cast %20 : vector<1x4x128xf32> to vector<4x128xf32>
    %c1_5 = arith.constant 1 : index
    %22 = memref.load %arg1[%c1_5] : memref<33xf32, #tpu.memory_space<smem>>
    %23 = vector.broadcast %22 : f32 to vector<4x128xf32>
    %24 = arith.mulf %23, %21 : vector<4x128xf32>
    %25 = arith.addf %7, %24 : vector<4x128xf32>
    %c12 = arith.constant 12 : index
    %26 = memref.load %arg1[%c12] : memref<33xf32, #tpu.memory_space<smem>>
    %27 = vector.broadcast %26 : f32 to vector<4x128xf32>
    %28 = arith.mulf %27, %21 : vector<4x128xf32>
    %29 = arith.addf %13, %28 : vector<4x128xf32>
    %c23 = arith.constant 23 : index
    %30 = memref.load %arg1[%c23] : memref<33xf32, #tpu.memory_space<smem>>
    %31 = vector.broadcast %30 : f32 to vector<4x128xf32>
    %32 = arith.mulf %31, %21 : vector<4x128xf32>
    %33 = arith.addf %19, %32 : vector<4x128xf32>
    %c2 = arith.constant 2 : index
    %c0_6 = arith.constant 0 : index
    %c0_7 = arith.constant 0 : index
    %34 = vector.load %arg2[%c2, %c0_6, %c0_7] : memref<10x4x128xf32, #tpu.memory_space<vmem>>, vector<1x4x128xf32>
    %35 = vector.shape_cast %34 : vector<1x4x128xf32> to vector<4x128xf32>
    %c2_8 = arith.constant 2 : index
    %36 = memref.load %arg1[%c2_8] : memref<33xf32, #tpu.memory_space<smem>>
    %37 = vector.broadcast %36 : f32 to vector<4x128xf32>
    %38 = arith.mulf %37, %35 : vector<4x128xf32>
    %39 = arith.addf %25, %38 : vector<4x128xf32>
    %c13 = arith.constant 13 : index
    %40 = memref.load %arg1[%c13] : memref<33xf32, #tpu.memory_space<smem>>
    %41 = vector.broadcast %40 : f32 to vector<4x128xf32>
    %42 = arith.mulf %41, %35 : vector<4x128xf32>
    %43 = arith.addf %29, %42 : vector<4x128xf32>
    %c24 = arith.constant 24 : index
    %44 = memref.load %arg1[%c24] : memref<33xf32, #tpu.memory_space<smem>>
    %45 = vector.broadcast %44 : f32 to vector<4x128xf32>
    %46 = arith.mulf %45, %35 : vector<4x128xf32>
    %47 = arith.addf %33, %46 : vector<4x128xf32>
    %c3 = arith.constant 3 : index
    %c0_9 = arith.constant 0 : index
    %c0_10 = arith.constant 0 : index
    %48 = vector.load %arg2[%c3, %c0_9, %c0_10] : memref<10x4x128xf32, #tpu.memory_space<vmem>>, vector<1x4x128xf32>
    %49 = vector.shape_cast %48 : vector<1x4x128xf32> to vector<4x128xf32>
    %c3_11 = arith.constant 3 : index
    %50 = memref.load %arg1[%c3_11] : memref<33xf32, #tpu.memory_space<smem>>
    %51 = vector.broadcast %50 : f32 to vector<4x128xf32>
    %52 = arith.mulf %51, %49 : vector<4x128xf32>
    %53 = arith.addf %39, %52 : vector<4x128xf32>
    %c14 = arith.constant 14 : index
    %54 = memref.load %arg1[%c14] : memref<33xf32, #tpu.memory_space<smem>>
    %55 = vector.broadcast %54 : f32 to vector<4x128xf32>
    %56 = arith.mulf %55, %49 : vector<4x128xf32>
    %57 = arith.addf %43, %56 : vector<4x128xf32>
    %c25 = arith.constant 25 : index
    %58 = memref.load %arg1[%c25] : memref<33xf32, #tpu.memory_space<smem>>
    %59 = vector.broadcast %58 : f32 to vector<4x128xf32>
    %60 = arith.mulf %59, %49 : vector<4x128xf32>
    %61 = arith.addf %47, %60 : vector<4x128xf32>
    %c4 = arith.constant 4 : index
    %c0_12 = arith.constant 0 : index
    %c0_13 = arith.constant 0 : index
    %62 = vector.load %arg2[%c4, %c0_12, %c0_13] : memref<10x4x128xf32, #tpu.memory_space<vmem>>, vector<1x4x128xf32>
    %63 = vector.shape_cast %62 : vector<1x4x128xf32> to vector<4x128xf32>
    %c4_14 = arith.constant 4 : index
    %64 = memref.load %arg1[%c4_14] : memref<33xf32, #tpu.memory_space<smem>>
    %65 = vector.broadcast %64 : f32 to vector<4x128xf32>
    %66 = arith.mulf %65, %63 : vector<4x128xf32>
    %67 = arith.addf %53, %66 : vector<4x128xf32>
    %c15 = arith.constant 15 : index
    %68 = memref.load %arg1[%c15] : memref<33xf32, #tpu.memory_space<smem>>
    %69 = vector.broadcast %68 : f32 to vector<4x128xf32>
    %70 = arith.mulf %69, %63 : vector<4x128xf32>
    %71 = arith.addf %57, %70 : vector<4x128xf32>
    %c26 = arith.constant 26 : index
    %72 = memref.load %arg1[%c26] : memref<33xf32, #tpu.memory_space<smem>>
    %73 = vector.broadcast %72 : f32 to vector<4x128xf32>
    %74 = arith.mulf %73, %63 : vector<4x128xf32>
    %75 = arith.addf %61, %74 : vector<4x128xf32>
    %c5 = arith.constant 5 : index
    %c0_15 = arith.constant 0 : index
    %c0_16 = arith.constant 0 : index
    %76 = vector.load %arg2[%c5, %c0_15, %c0_16] : memref<10x4x128xf32, #tpu.memory_space<vmem>>, vector<1x4x128xf32>
    %77 = vector.shape_cast %76 : vector<1x4x128xf32> to vector<4x128xf32>
    %c5_17 = arith.constant 5 : index
    %78 = memref.load %arg1[%c5_17] : memref<33xf32, #tpu.memory_space<smem>>
    %79 = vector.broadcast %78 : f32 to vector<4x128xf32>
    %80 = arith.mulf %79, %77 : vector<4x128xf32>
    %81 = arith.addf %67, %80 : vector<4x128xf32>
    %c16 = arith.constant 16 : index
    %82 = memref.load %arg1[%c16] : memref<33xf32, #tpu.memory_space<smem>>
    %83 = vector.broadcast %82 : f32 to vector<4x128xf32>
    %84 = arith.mulf %83, %77 : vector<4x128xf32>
    %85 = arith.addf %71, %84 : vector<4x128xf32>
    %c27 = arith.constant 27 : index
    %86 = memref.load %arg1[%c27] : memref<33xf32, #tpu.memory_space<smem>>
    %87 = vector.broadcast %86 : f32 to vector<4x128xf32>
    %88 = arith.mulf %87, %77 : vector<4x128xf32>
    %89 = arith.addf %75, %88 : vector<4x128xf32>
    %c6 = arith.constant 6 : index
    %c0_18 = arith.constant 0 : index
    %c0_19 = arith.constant 0 : index
    %90 = vector.load %arg2[%c6, %c0_18, %c0_19] : memref<10x4x128xf32, #tpu.memory_space<vmem>>, vector<1x4x128xf32>
    %91 = vector.shape_cast %90 : vector<1x4x128xf32> to vector<4x128xf32>
    %c6_20 = arith.constant 6 : index
    %92 = memref.load %arg1[%c6_20] : memref<33xf32, #tpu.memory_space<smem>>
    %93 = vector.broadcast %92 : f32 to vector<4x128xf32>
    %94 = arith.mulf %93, %91 : vector<4x128xf32>
    %95 = arith.addf %81, %94 : vector<4x128xf32>
    %c17 = arith.constant 17 : index
    %96 = memref.load %arg1[%c17] : memref<33xf32, #tpu.memory_space<smem>>
    %97 = vector.broadcast %96 : f32 to vector<4x128xf32>
    %98 = arith.mulf %97, %91 : vector<4x128xf32>
    %99 = arith.addf %85, %98 : vector<4x128xf32>
    %c28 = arith.constant 28 : index
    %100 = memref.load %arg1[%c28] : memref<33xf32, #tpu.memory_space<smem>>
    %101 = vector.broadcast %100 : f32 to vector<4x128xf32>
    %102 = arith.mulf %101, %91 : vector<4x128xf32>
    %103 = arith.addf %89, %102 : vector<4x128xf32>
    %c7 = arith.constant 7 : index
    %c0_21 = arith.constant 0 : index
    %c0_22 = arith.constant 0 : index
    %104 = vector.load %arg2[%c7, %c0_21, %c0_22] : memref<10x4x128xf32, #tpu.memory_space<vmem>>, vector<1x4x128xf32>
    %105 = vector.shape_cast %104 : vector<1x4x128xf32> to vector<4x128xf32>
    %c7_23 = arith.constant 7 : index
    %106 = memref.load %arg1[%c7_23] : memref<33xf32, #tpu.memory_space<smem>>
    %107 = vector.broadcast %106 : f32 to vector<4x128xf32>
    %108 = arith.mulf %107, %105 : vector<4x128xf32>
    %109 = arith.addf %95, %108 : vector<4x128xf32>
    %c18 = arith.constant 18 : index
    %110 = memref.load %arg1[%c18] : memref<33xf32, #tpu.memory_space<smem>>
    %111 = vector.broadcast %110 : f32 to vector<4x128xf32>
    %112 = arith.mulf %111, %105 : vector<4x128xf32>
    %113 = arith.addf %99, %112 : vector<4x128xf32>
    %c29 = arith.constant 29 : index
    %114 = memref.load %arg1[%c29] : memref<33xf32, #tpu.memory_space<smem>>
    %115 = vector.broadcast %114 : f32 to vector<4x128xf32>
    %116 = arith.mulf %115, %105 : vector<4x128xf32>
    %117 = arith.addf %103, %116 : vector<4x128xf32>
    %c8 = arith.constant 8 : index
    %c0_24 = arith.constant 0 : index
    %c0_25 = arith.constant 0 : index
    %118 = vector.load %arg2[%c8, %c0_24, %c0_25] : memref<10x4x128xf32, #tpu.memory_space<vmem>>, vector<1x4x128xf32>
    %119 = vector.shape_cast %118 : vector<1x4x128xf32> to vector<4x128xf32>
    %c8_26 = arith.constant 8 : index
    %120 = memref.load %arg1[%c8_26] : memref<33xf32, #tpu.memory_space<smem>>
    %121 = vector.broadcast %120 : f32 to vector<4x128xf32>
    %122 = arith.mulf %121, %119 : vector<4x128xf32>
    %123 = arith.addf %109, %122 : vector<4x128xf32>
    %c19 = arith.constant 19 : index
    %124 = memref.load %arg1[%c19] : memref<33xf32, #tpu.memory_space<smem>>
    %125 = vector.broadcast %124 : f32 to vector<4x128xf32>
    %126 = arith.mulf %125, %119 : vector<4x128xf32>
    %127 = arith.addf %113, %126 : vector<4x128xf32>
    %c30 = arith.constant 30 : index
    %128 = memref.load %arg1[%c30] : memref<33xf32, #tpu.memory_space<smem>>
    %129 = vector.broadcast %128 : f32 to vector<4x128xf32>
    %130 = arith.mulf %129, %119 : vector<4x128xf32>
    %131 = arith.addf %117, %130 : vector<4x128xf32>
    %c9 = arith.constant 9 : index
    %c0_27 = arith.constant 0 : index
    %c0_28 = arith.constant 0 : index
    %132 = vector.load %arg2[%c9, %c0_27, %c0_28] : memref<10x4x128xf32, #tpu.memory_space<vmem>>, vector<1x4x128xf32>
    %133 = vector.shape_cast %132 : vector<1x4x128xf32> to vector<4x128xf32>
    %c9_29 = arith.constant 9 : index
    %134 = memref.load %arg1[%c9_29] : memref<33xf32, #tpu.memory_space<smem>>
    %135 = vector.broadcast %134 : f32 to vector<4x128xf32>
    %136 = arith.mulf %135, %133 : vector<4x128xf32>
    %137 = arith.addf %123, %136 : vector<4x128xf32>
    %c20 = arith.constant 20 : index
    %138 = memref.load %arg1[%c20] : memref<33xf32, #tpu.memory_space<smem>>
    %139 = vector.broadcast %138 : f32 to vector<4x128xf32>
    %140 = arith.mulf %139, %133 : vector<4x128xf32>
    %141 = arith.addf %127, %140 : vector<4x128xf32>
    %c31 = arith.constant 31 : index
    %142 = memref.load %arg1[%c31] : memref<33xf32, #tpu.memory_space<smem>>
    %143 = vector.broadcast %142 : f32 to vector<4x128xf32>
    %144 = arith.mulf %143, %133 : vector<4x128xf32>
    %145 = arith.addf %131, %144 : vector<4x128xf32>
    %146 = arith.maximumf %137, %141 : vector<4x128xf32>
    %147 = arith.maximumf %146, %145 : vector<4x128xf32>
    %148 = arith.subf %137, %147 : vector<4x128xf32>
    %149 = math.exp %148 : vector<4x128xf32>
    %150 = arith.subf %141, %147 : vector<4x128xf32>
    %151 = math.exp %150 : vector<4x128xf32>
    %152 = arith.addf %149, %151 : vector<4x128xf32>
    %153 = arith.subf %145, %147 : vector<4x128xf32>
    %154 = math.exp %153 : vector<4x128xf32>
    %155 = arith.addf %152, %154 : vector<4x128xf32>
    %156 = math.log %155 : vector<4x128xf32>
    %157 = arith.addf %147, %156 : vector<4x128xf32>
    %158 = arith.subf %137, %157 : vector<4x128xf32>
    %c0_30 = arith.constant 0 : index
    %c0_31 = arith.constant 0 : index
    %c0_32 = arith.constant 0 : index
    %159 = vector.load %arg3[%c0_30, %c0_31, %c0_32] : memref<3x4x128xf32, #tpu.memory_space<vmem>>, vector<1x4x128xf32>
    %160 = vector.shape_cast %159 : vector<1x4x128xf32> to vector<4x128xf32>
    %161 = vector.shape_cast %158 : vector<4x128xf32> to vector<1x4x128xf32>
    tpu.vector_store %arg3[%c0_30, %c0_31, %c0_32], %161 {strides = array<i32>} : memref<3x4x128xf32, #tpu.memory_space<vmem>>, vector<1x4x128xf32>,
    %162 = arith.subf %141, %157 : vector<4x128xf32>
    %c1_33 = arith.constant 1 : index
    %c0_34 = arith.constant 0 : index
    %c0_35 = arith.constant 0 : index
    %163 = vector.load %arg3[%c1_33, %c0_34, %c0_35] : memref<3x4x128xf32, #tpu.memory_space<vmem>>, vector<1x4x128xf32>
    %164 = vector.shape_cast %163 : vector<1x4x128xf32> to vector<4x128xf32>
    %165 = vector.shape_cast %162 : vector<4x128xf32> to vector<1x4x128xf32>
    tpu.vector_store %arg3[%c1_33, %c0_34, %c0_35], %165 {strides = array<i32>} : memref<3x4x128xf32, #tpu.memory_space<vmem>>, vector<1x4x128xf32>,
    %166 = arith.subf %145, %157 : vector<4x128xf32>
    %c2_36 = arith.constant 2 : index
    %c0_37 = arith.constant 0 : index
    %c0_38 = arith.constant 0 : index
    %167 = vector.load %arg3[%c2_36, %c0_37, %c0_38] : memref<3x4x128xf32, #tpu.memory_space<vmem>>, vector<1x4x128xf32>
    %168 = vector.shape_cast %167 : vector<1x4x128xf32> to vector<4x128xf32>
    %169 = vector.shape_cast %166 : vector<4x128xf32> to vector<1x4x128xf32>
    tpu.vector_store %arg3[%c2_36, %c0_37, %c0_38], %169 {strides = array<i32>} : memref<3x4x128xf32, #tpu.memory_space<vmem>>, vector<1x4x128xf32>,
    return
  }
  func.func @transform_0(%arg0: i32) -> i32 {
    %c0_i32 = arith.constant 0 : i32
    %c0_i32_0 = arith.constant 0 : i32
    return %c0_i32 : i32
  }
  func.func @transform_1(%arg0: i32) -> (i32, i32, i32) {
    %c0_i32 = arith.constant 0 : i32
    %c0_i32_0 = arith.constant 0 : i32
    %c0_i32_1 = arith.constant 0 : i32
    return %c0_i32, %arg0, %c0_i32_0 : i32, i32, i32
  }
  func.func @transform_2(%arg0: i32) -> (i32, i32, i32) {
    %c0_i32 = arith.constant 0 : i32
    %c0_i32_0 = arith.constant 0 : i32
    %c0_i32_1 = arith.constant 0 : i32
    return %c0_i32, %arg0, %c0_i32_0 : i32, i32, i32
  }
}

</mosaic_0001>

<bundles_post_ra>
// kernel: tpu_custom_call.1
= control target key start
LH: loop header
LB: loop body
LE: loop exit
PB: predicated region body
PF: predicated region fallthrough
CT: control target
= control target key end

     0   :  { %7 = vsyncpa [#allocation5], 0  ;;  %s472_s0 = inlined_call_operand.hbm [shape: f32[33], index: 0, kind: input, shape index: {}]   ;;  %s473_s1 = inlined_call_operand.hbm [shape: f32[10,4,128], index: 1, kind: input, shape index: {}]   ;;  %s474_s2 = inlined_call_operand.hbm [shape: f32[3,4,128], index: 2, kind: output, shape index: {}]  }
   0x1   :  { %8 = vsyncpa [#allocation3], 0 }
   0x2   :  { %9 = vsyncpa [#allocation4], 0  ;;  %s269_s11 = scalar_lea.hbm %s472_s0, 16 }
   0x3   :  { %p270_p0 = scmp.ne.s32.totalorder %s472_s0, %s269_s11  ;;  %p273_p1 = scmp.lt.u32.totalorder %s269_s11, %s472_s0 }
   0x5   :  { %p275_p2 = pnand %p273_p1, %p270_p0 }
   0x7   :  { %278 = shalt.err (!%p275_p2)
}
   0x8   :  { %s329_s16 = smov [#allocation2]   ;;  %s330_s19 = smov [#allocation6]  }
   0x9   :  { %17 = dma.hbm_to_smem %s472_s0, 16, %s329_s16, [#allocation5]  }
   0xa   :  { %s23_s20 = sshll.u32 %s330_s19, 4  ;;  %s279_s23 = scalar_lea.hbm %s473_s1, 640  ;;  %s24_s20 = int_to_ptr.vmem [resolvable:$true] %s23_s20 }
   0xb   :  { %p280_p3 = scmp.ne.s32.totalorder %s473_s1, %s279_s23  ;;  %p283_p4 = scmp.lt.u32.totalorder %s279_s23, %s473_s1 }
   0xd   :  { %p285_p5 = pnand %p283_p4, %p280_p3 }
   0xf   :  { %288 = shalt.err (!%p285_p5)
}
  0x10   :  { %s289_s28 = scalar_lea.vmem %s24_s20, 640  ;;  %p294_p7 = scmp.lt.s32.totalorder %s24_s20, %s24_s20 }
  0x11   :  { %p290_p6 = scmp.ne.s32.totalorder %s24_s20, %s289_s28  ;;  %p295_p8 = scmp.lt.s32.totalorder %s289_s28, %s289_s28 }
  0x13   :  { %p296_p9 = por %p295_p8, %p294_p7 }
  0x15   :  { %p297_p10 = pnand %p296_p9, %p290_p6 }
  0x17   :  { %300 = shalt.err (!%p297_p10)
}
  0x18   :  { %s331_s0 = smov 64   ;;  %s332_s29 = smov 4  }
  0x19   :  { %29 = dma.hbm_to_vmem [thread:$0]  %s473_s1, 640, %s24_s20, [#allocation3], %s331_s0, %s331_s0, %s332_s29  }
  0x1a   :  { %323 = dma.done.wait [#allocation5], 16  }
  0x1b   :  { %324 = vsyncadd [#allocation5], 4294967280 }
  0x1c   :  { %325 = dma.done.wait [#allocation3], 640  }
  0x1d   :  { %326 = vsyncadd [#allocation3], 4294966656 }
  0x1e   :  { %36 = sfence }
  0x1f   :  { %s224_s4 = sld [smem:[#allocation2 + $0xa]]  ;;  %s39_s5 = sld [smem:[#allocation2]]  ;;  %v37_v0 = vld [vmem:[#allocation6] sm:$0xf]  ;;  %v57_v6 = vld [vmem:[#allocation6 + $0x4] sm:$0xf] }
  0x20   :  { %s376_s6 = sld [smem:[#allocation2 + $0x15]]  ;;  %s226_s7 = sld [smem:[#allocation2 + $0xb]]  ;;  %v71_v14 = vld [vmem:[#allocation6 + $0x8] sm:$0xf]  ;;  %v85_v23 = vld [vmem:[#allocation6 + $0xc] sm:$0xf] }
  0x21   :  { %s378_s8 = sld [smem:[#allocation2 + $0x20]]  ;;  %s228_s9 = sld [smem:[#allocation2 + $0x16]]  ;;  %v99_v32 = vld [vmem:[#allocation6 + $0x10] sm:$0xf]  ;;  %v113_v41 = vld [vmem:[#allocation6 + $0x14] sm:$0xf] }
  0x22   :  { %s229_s10 = sld [smem:[#allocation2 + $0x1]]  ;;  %s230_s11 = sld [smem:[#allocation2 + $0xc]]  ;;  %v127_v54 = vld [vmem:[#allocation6 + $0x18] sm:$0xf]  ;;  %v141_v63 = vld [vmem:[#allocation6 + $0x1c] sm:$0xf] }
  0x23   :  { %s380_s12 = sld [smem:[#allocation2 + $0x17]]  ;;  %s382_s1 = sld [smem:[#allocation2 + $0x2]] }
  0x24   :  { %s384_s13 = sld [smem:[#allocation2 + $0xd]]  ;;  %s386_s14 = sld [smem:[#allocation2 + $0x18]] }
  0x25   :  { %v40_v1 = vstv %s39_s5  ;;  %v42_v2 = vstv %s224_s4  ;;  %s388_s15 = sld [smem:[#allocation2 + $0x3]]  ;;  %s390_s16 = sld [smem:[#allocation2 + $0xe]] }
  0x26   :  { %v41_v3 = vmul.f32 %v40_v1, %v37_v0  ;;  %v46_v4 = vstv %s226_s7  ;;  %v48_v5 = vstv %s376_s6  ;;  %s393_s17 = sld [smem:[#allocation2 + $0x19]]  ;;  %s395_s18 = sld [smem:[#allocation2 + $0x4]] }
  0x27   :  { %v47_v7 = vmul.f32 %v46_v4, %v37_v0  ;;  %v52_v8 = vstv %s228_s9  ;;  %v54_v9 = vstv %s378_s8  ;;  %s398_s19 = sld [smem:[#allocation2 + $0xf]]  ;;  %s400_s20 = sld [smem:[#allocation2 + $0x1a]] }
  0x28   :  { %v43_v10 = vadd.f32 %v42_v2, %v41_v3  ;;  %v53_v11 = vmul.f32 %v52_v8, %v37_v0  ;;  %v59_v12 = vstv %s229_s10  ;;  %v63_v13 = vstv %s230_s11  ;;  %s402_s21 = sld [smem:[#allocation2 + $0x5]]  ;;  %s405_s22 = sld [smem:[#allocation2 + $0x10]] }
  0x29   :  { %v49_v15 = vadd.f32 %v48_v5, %v47_v7  ;;  %v60_v16 = vmul.f32 %v59_v12, %v57_v6  ;;  %v64_v17 = vmul.f32 %v63_v13, %v57_v6  ;;  %v67_v18 = vstv %s380_s12  ;;  %s409_s23 = sld [smem:[#allocation2 + $0x1b]]  ;;  %s411_s24 = sld [smem:[#allocation2 + $0x6]]  ;;  %v155_v12 = vld [vmem:[#allocation6 + $0x20] sm:$0xf] }
  0x2a   :  { %v55_v19 = vadd.f32 %v54_v9, %v53_v11  ;;  %v68_v20 = vmul.f32 %v67_v18, %v57_v6  ;;  %v73_v21 = vstv %s382_s1  ;;  %v77_v22 = vstv %s384_s13  ;;  %s413_s25 = sld [smem:[#allocation2 + $0x11]]  ;;  %s418_s26 = sld [smem:[#allocation2 + $0x1c]] }
  0x2b   :  { %v61_v24 = vadd.f32 %v60_v16, %v43_v10  ;;  %v65_v25 = vadd.f32 %v64_v17, %v49_v15  ;;  %v74_v26 = vmul.f32 %v73_v21, %v71_v14  ;;  %v78_v27 = vmul.f32 %v77_v22, %v71_v14  ;;  %s420_s27 = sld [smem:[#allocation2 + $0x7]]  ;;  %s425_s28 = sld [smem:[#allocation2 + $0x12]]  ;;  %v169_v21 = vld [vmem:[#allocation6 + $0x24] sm:$0xf] }
  0x2c   :  { %v69_v28 = vadd.f32 %v68_v20, %v55_v19  ;;  %v81_v29 = vstv %s386_s14  ;;  %v87_v30 = vstv %s388_s15  ;;  %v91_v31 = vstv %s390_s16  ;;  %s427_s30 = sld [smem:[#allocation2 + $0x1d]]  ;;  %s429_s3 = sld [smem:[#allocation2 + $0x8]] }
  0x2d   :  { %v75_v33 = vadd.f32 %v74_v26, %v61_v24  ;;  %v79_v34 = vadd.f32 %v78_v27, %v65_v25  ;;  %v82_v35 = vmul.f32 %v81_v29, %v71_v14  ;;  %v88_v36 = vmul.f32 %v87_v30, %v85_v23  ;;  %s433_s4 = sld [smem:[#allocation2 + $0x13]]  ;;  %s435_s5 = sld [smem:[#allocation2 + $0x1e]] }
  0x2e   :  { %v92_v37 = vmul.f32 %v91_v31, %v85_v23  ;;  %v95_v38 = vstv %s393_s17  ;;  %v101_v39 = vstv %s395_s18  ;;  %v105_v40 = vstv %s398_s19  ;;  %s437_s6 = sld [smem:[#allocation2 + $0x9]]  ;;  %s442_s7 = sld [smem:[#allocation2 + $0x14]] }
  0x2f   :  { %v83_v42 = vadd.f32 %v82_v35, %v69_v28  ;;  %v89_v43 = vadd.f32 %v88_v36, %v75_v33  ;;  %v96_v44 = vmul.f32 %v95_v38, %v85_v23  ;;  %v102_v45 = vmul.f32 %v101_v39, %v99_v32  ;;  %s444_s8 = sld [smem:[#allocation2 + $0x1f]]  ;;  %s333_s9 = smov [#allocation7]  }
  0x30   :  { %v93_v46 = vadd.f32 %v92_v37, %v79_v34  ;;  %v106_v47 = vmul.f32 %v105_v40, %v99_v32  ;;  %v109_v48 = vstv %s400_s20  ;;  %v115_v49 = vstv %s402_s21  ;;  %s211_s10 = sshll.u32 %s333_s9, 4  ;;  %s212_s10 = int_to_ptr.vmem [resolvable:$true] %s211_s10 }
  0x31   :  { %v97_v50 = vadd.f32 %v96_v44, %v83_v42  ;;  %v103_v51 = vadd.f32 %v102_v45, %v89_v43  ;;  %v110_v52 = vmul.f32 %v109_v48, %v99_v32  ;;  %v116_v53 = vmul.f32 %v115_v49, %v113_v41  ;;  %s301_s11 = scalar_lea.vmem %s212_s10, 192  ;;  %p306_p12 = scmp.lt.s32.totalorder %s212_s10, %s212_s10 }
  0x32   :  { %v107_v55 = vadd.f32 %v106_v47, %v93_v46  ;;  %v119_v56 = vstv %s405_s22  ;;  %v123_v57 = vstv %s409_s23  ;;  %v129_v58 = vstv %s411_s24  ;;  %p302_p11 = scmp.ne.s32.totalorder %s212_s10, %s301_s11  ;;  %p307_p13 = scmp.lt.s32.totalorder %s301_s11, %s301_s11 }
  0x33   :  { %v111_v59 = vadd.f32 %v110_v52, %v97_v50  ;;  %v117_v60 = vadd.f32 %v116_v53, %v103_v51  ;;  %v120_v61 = vmul.f32 %v119_v56, %v113_v41  ;;  %v124_v62 = vmul.f32 %v123_v57, %v113_v41 }
  0x34   :  { %v130_v0 = vmul.f32 %v129_v58, %v127_v54  ;;  %v133_v1 = vstv %s413_s25  ;;  %v137_v2 = vstv %s418_s26  ;;  %v143_v3 = vstv %s420_s27  ;;  %p308_p0 = por %p307_p13, %p306_p12 }
  0x35   :  { %v121_v4 = vadd.f32 %v120_v61, %v107_v55  ;;  %v125_v5 = vadd.f32 %v124_v62, %v111_v59  ;;  %v134_v6 = vmul.f32 %v133_v1, %v127_v54  ;;  %v138_v7 = vmul.f32 %v137_v2, %v127_v54 }
  0x36   :  { %v131_v8 = vadd.f32 %v130_v0, %v117_v60  ;;  %v144_v9 = vmul.f32 %v143_v3, %v141_v63  ;;  %v147_v10 = vstv %s425_s28  ;;  %v151_v11 = vstv %s427_s30  ;;  %p309_p1 = pnand %p308_p0, %p302_p11 }
  0x37   :  { %v135_v13 = vadd.f32 %v134_v6, %v121_v4  ;;  %v139_v14 = vadd.f32 %v138_v7, %v125_v5  ;;  %v148_v15 = vmul.f32 %v147_v10, %v141_v63  ;;  %v152_v16 = vmul.f32 %v151_v11, %v141_v63 }
  0x38   :  { %v145_v17 = vadd.f32 %v144_v9, %v131_v8  ;;  %v157_v18 = vstv %s429_s3  ;;  %v161_v19 = vstv %s433_s4  ;;  %v165_v20 = vstv %s435_s5 }
  0x39   :  { %v149_v22 = vadd.f32 %v148_v15, %v135_v13  ;;  %v153_v23 = vadd.f32 %v152_v16, %v139_v14  ;;  %v158_v24 = vmul.f32 %v157_v18, %v155_v12  ;;  %v162_v25 = vmul.f32 %v161_v19, %v155_v12 }
  0x3a   :  { %v166_v26 = vmul.f32 %v165_v20, %v155_v12  ;;  %v171_v27 = vstv %s437_s6  ;;  %v175_v28 = vstv %s442_s7  ;;  %v179_v29 = vstv %s444_s8 }
  0x3b   :  { %v159_v30 = vadd.f32 %v158_v24, %v145_v17  ;;  %v163_v31 = vadd.f32 %v162_v25, %v149_v22  ;;  %v172_v32 = vmul.f32 %v171_v27, %v169_v21  ;;  %v176_v33 = vmul.f32 %v175_v28, %v169_v21 }
  0x3c   :  { %v167_v34 = vadd.f32 %v166_v26, %v153_v23  ;;  %v180_v35 = vmul.f32 %v179_v29, %v169_v21 }
  0x3d   :  { %v173_v36 = vadd.f32 %v172_v32, %v159_v30  ;;  %v177_v37 = vadd.f32 %v176_v33, %v163_v31 }
  0x3e   :  { %v181_v38 = vadd.f32 %v180_v35, %v167_v34 }
  0x3f   :  { %v182_v39 = vmax.f32 %v173_v36, %v177_v37 }
  0x41   :  { %v183_v40 = vmax.f32 %v182_v39, %v181_v38 }
  0x43   :  { %v184_v41 = vsub.f32 %v173_v36, %v183_v40  ;;  %v187_v42 = vsub.f32 %v177_v37, %v183_v40  ;;  %v191_v43 = vsub.f32 %v181_v38, %v183_v40 }
  0x45   :  { %v185_v44 = vmul.f32 1.442695, %v184_v41  ;;  %v188_v45 = vmul.f32 1.442695, %v187_v42  ;;  %v192_v46 = vmul.f32 1.442695, %v191_v43 }
  0x47   :  { %261 = vpow2.f32 %v185_v44 }
  0x48   :  { %263 = vpow2.f32 %v188_v45 }
  0x49   :  { %265 = vpow2.f32 %v192_v46 }
  0x51   :  { %v262_v47 = vpop.eup %261 }
  0x52   :  { %v264_v48 = vpop.eup %263 }
  0x53   :  { %v266_v49 = vpop.eup %265  ;;  %v190_v50 = vadd.f32 %v264_v48, %v262_v47 }
  0x55   :  { %v194_v51 = vadd.f32 %v266_v49, %v190_v50 }
  0x57   :  { %267 = vlog2.f32 %v194_v51 }
  0x61   :  { %v268_v52 = vpop.eup %267 }
  0x62   :  { %v196_v53 = vmul.f32 0.6931472, %v268_v52 }
  0x64   :  { %v197_v54 = vadd.f32 %v196_v53, %v183_v40 }
  0x66   :  { %v198_v55 = vsub.f32 %v173_v36, %v197_v54  ;;  %v200_v56 = vsub.f32 %v177_v37, %v197_v54  ;;  %v203_v57 = vsub.f32 %v181_v38, %v197_v54 }
  0x68   :  { %199 = vst [vmem:[#allocation7] sm:$0xf] %v198_v55  ;;  %202 = vst [vmem:[#allocation7 + $0x4] sm:$0xf] %v200_v56 }
  0x69   :  { %205 = vst [vmem:[#allocation7 + $0x8] sm:$0xf] %v203_v57 }
  0x6a   :  { %312 = shalt.err (!%p309_p1)
}
  0x6b   :  { %s313_s13 = scalar_lea.hbm %s474_s2, 192 }
  0x6c   :  { %p314_p2 = scmp.ne.s32.totalorder %s474_s2, %s313_s13  ;;  %p317_p3 = scmp.lt.u32.totalorder %s313_s13, %s474_s2 }
  0x6e   :  { %p319_p4 = pnand %p317_p3, %p314_p2 }
  0x70   :  { %322 = shalt.err (!%p319_p4)
}
  0x71   :  { %217 = dma.vmem_to_hbm [thread:$0]  %s212_s10, 192, %s474_s2, [#allocation4], %s331_s0, %s331_s0, %s332_s29  }
  0x72   :  { %327 = dma.done.wait [#allocation4], 192  }
  0x73   :  { %328 = vsyncadd [#allocation4], 4294967104 }
  0x74   :  { %221 = vsyncpa [#allocation3], 1 }
  0x75   :  { %222 = vsyncpa [#allocation4], 1 }
  0x76   :  { %223 = vsyncpa [#allocation5], 1 }

</bundles_post_ra>
